<compile_context>
chip_gen: v6e
topology: v6e:2x2x1
jax: 0.10.0
libtpu: 0.0.40
codegen_flags: <defaults>
</compile_context>

<pallas_src>
import math

import jax
import jax.numpy as jnp
from jax.experimental import pallas as pl
from jax.experimental.pallas import tpu as pltpu

_MIB = 1024 * 1024


def _vmem_limit_bytes():
    """Per-generation VMEM budget: physical capacity minus headroom, capped."""
    try:
        cap = int(pltpu.get_tpu_info().vmem_capacity_bytes)
    except Exception:
        cap = 64 * _MIB  # safe default on every generation
    # ~16 MiB headroom for compiler-internal scratch / semaphores; cap at
    # 100 MiB on 128-MiB parts (v5e/v6e); -> ~48 MiB on v7x (64 MiB physical).
    return int(max(32 * _MIB, min(cap - 16 * _MIB, 100 * _MIB)))


def _pick_tile(total, preferred=(256, 128)):
    for t in preferred:
        if total % t == 0:
            return t
    return total


# ----------------------------------------------------------------------------
# Linear kernel: y = x @ w + b, full contraction width, f32 accumulation.
# ----------------------------------------------------------------------------
def _linear_kernel(x_ref, w_ref, b_ref, o_ref):
    cdt = w_ref.dtype                         # MXU operand dtype (bf16 by default)
    x = x_ref[0].astype(cdt)                  # (tt, Cin)
    y = jnp.dot(x, w_ref[...], preferred_element_type=jnp.float32) + b_ref[...]
    o_ref[0] = y.astype(o_ref.dtype)


def _linear(x, w, b, out_dtype, vmem_limit):
    """x: (B, T, Cin), w: (Cin, Cout) in compute dtype, b: (1, Cout) f32."""
    B, T, Cin = x.shape
    Cout = w.shape[1]
    tt = _pick_tile(T)
    grid = (B, T // tt)

    flops = 2 * B * T * Cin * Cout
    bytes_accessed = (x.size * x.dtype.itemsize
                      + w.size * w.dtype.itemsize
                      + b.size * b.dtype.itemsize
                      + B * T * Cout * jnp.dtype(out_dtype).itemsize)

    return pl.pallas_call(
        _linear_kernel,
        out_shape=jax.ShapeDtypeStruct((B, T, Cout), out_dtype),
        grid=grid,
        in_specs=[
            pl.BlockSpec((1, tt, Cin), lambda bi, ti: (bi, ti, 0)),
            # Constant block index -> weight DMA'd into VMEM once per call.
            pl.BlockSpec((Cin, Cout), lambda bi, ti: (0, 0)),
            pl.BlockSpec((1, Cout), lambda bi, ti: (0, 0)),
        ],
        out_specs=pl.BlockSpec((1, tt, Cout), lambda bi, ti: (bi, ti, 0)),
        compiler_params=pltpu.CompilerParams(
            dimension_semantics=("parallel", "parallel"),
            vmem_limit_bytes=vmem_limit),
        cost_estimate=pl.CostEstimate(flops=int(flops), transcendentals=0,
                                      bytes_accessed=int(bytes_accessed)),
    )(x, w, b)


# ----------------------------------------------------------------------------
# Flash-style attention kernel over head-major (B, H, T, hs) tensors.
# ----------------------------------------------------------------------------
def _flash_attn_kernel(q_ref, k_ref, v_ref, o_ref, m_sc, l_sc, acc_sc):
    ki = pl.program_id(3)

    @pl.when(ki == 0)
    def _():
        m_sc[...] = jnp.full_like(m_sc, -jnp.inf)
        l_sc[...] = jnp.zeros_like(l_sc)
        acc_sc[...] = jnp.zeros_like(acc_sc)

    q = q_ref[0, 0]                           # (tq, hs) — scale folded into Wq
    k = k_ref[0, 0]                           # (tk, hs)
    v = v_ref[0, 0]                           # (tk, hs)

    # scores = q @ k^T, contracting the last dims directly (no transpose).
    s = jax.lax.dot_general(q, k, (((1,), (1,)), ((), ())),
                            preferred_element_type=jnp.float32)      # (tq, tk)

    m_prev = m_sc[...]
    m_new = jnp.maximum(m_prev, jnp.max(s, axis=-1, keepdims=True))
    alpha = jnp.exp(m_prev - m_new)
    p = jnp.exp(s - m_new)                    # single live (tq, tk) f32 array
    l_sc[...] = alpha * l_sc[...] + jnp.sum(p, axis=-1, keepdims=True)
    acc_sc[...] = alpha * acc_sc[...] + jnp.dot(
        p.astype(v.dtype), v, preferred_element_type=jnp.float32)
    m_sc[...] = m_new

    @pl.when(ki == pl.num_programs(3) - 1)
    def _():
        o_ref[0, 0] = (acc_sc[...] *
                       pl.reciprocal(l_sc[...], approx=True)).astype(o_ref.dtype)


def _flash_attention(qh, kh, vh, vmem_limit):
    """qh: (B, H, Tq, hs), kh/vh: (B, H, Tk, hs) -> softmax(q k^T) v."""
    B, H, Tq, hs = qh.shape
    Tk = kh.shape[2]
    tq = _pick_tile(Tq)
    tk = _pick_tile(Tk)
    grid = (B, H, Tq // tq, Tk // tk)

    flops = 4 * B * H * Tq * Tk * hs
    bytes_accessed = (qh.size + kh.size + vh.size + qh.size) * qh.dtype.itemsize

    return pl.pallas_call(
        _flash_attn_kernel,
        out_shape=jax.ShapeDtypeStruct(qh.shape, qh.dtype),
        grid=grid,
        in_specs=[
            pl.BlockSpec((1, 1, tq, hs), lambda b, h, qi, ki: (b, h, qi, 0)),
            pl.BlockSpec((1, 1, tk, hs), lambda b, h, qi, ki: (b, h, ki, 0)),
            pl.BlockSpec((1, 1, tk, hs), lambda b, h, qi, ki: (b, h, ki, 0)),
        ],
        out_specs=pl.BlockSpec((1, 1, tq, hs), lambda b, h, qi, ki: (b, h, qi, 0)),
        scratch_shapes=[
            pltpu.VMEM((tq, 1), jnp.float32),    # running max
            pltpu.VMEM((tq, 1), jnp.float32),    # running sum
            pltpu.VMEM((tq, hs), jnp.float32),   # output accumulator
        ],
        compiler_params=pltpu.CompilerParams(
            dimension_semantics=("parallel", "parallel", "parallel", "arbitrary"),
            vmem_limit_bytes=vmem_limit),
        cost_estimate=pl.CostEstimate(flops=int(flops),
                                      transcendentals=int(B * H * Tq * Tk),
                                      bytes_accessed=int(bytes_accessed)),
    )(qh, kh, vh)


# ----------------------------------------------------------------------------
# Full forward pass.
# ----------------------------------------------------------------------------
def multi_head_attention(k, q, v, params, n_head, compute_dtype=jnp.bfloat16):
    """k: (B, Tk, C), q: (B, Tq, C), v: (B, Tk, C) -> (B, Tq, C)."""
    B, Tk, C = k.shape
    Tq = q.shape[1]
    assert C % n_head == 0
    hs = C // n_head
    wk, bk, wq, bq, wv, bv, wo, bo = params

    out_dtype = q.dtype
    scale = 1.0 / math.sqrt(hs)
    vmem_limit = _vmem_limit_bytes()

    # MXU operands in compute_dtype (bf16-native on v5e/v6e/v7x), f32 accumulate.
    # The 1/sqrt(hs) scale is folded into the query projection (same math).
    wq_c = (wq * scale).astype(compute_dtype)
    bq_c = (bq * scale).astype(jnp.float32)
    wk_c = wk.astype(compute_dtype)
    wv_c = wv.astype(compute_dtype)
    wo_c = wo.astype(compute_dtype)
    bk_c = bk.astype(jnp.float32)
    bv_c = bv.astype(jnp.float32)
    bo_c = bo.astype(jnp.float32)

    # Q/K/V projections: computed once each, full contraction/output width C.
    qp = _linear(q, wq_c, bq_c, compute_dtype, vmem_limit)    # (B, Tq, C)
    kp = _linear(k, wk_c, bk_c, compute_dtype, vmem_limit)    # (B, Tk, C)
    vp = _linear(v, wv_c, bv_c, compute_dtype, vmem_limit)    # (B, Tk, C)

    # Head-major layout (layout plumbing done by XLA outside the kernels, keeps
    # every in-kernel block lane-dense with full-hs last dim).
    def to_heads(x, T):
        return x.reshape(B, T, n_head, hs).transpose(0, 2, 1, 3)

    y = _flash_attention(to_heads(qp, Tq), to_heads(kp, Tk), to_heads(vp, Tk),
                         vmem_limit)                          # (B, H, Tq, hs)
    y = y.transpose(0, 2, 1, 3).reshape(B, Tq, C)

    # Output projection: a single contraction-depth-C matmul.
    return _linear(y, wo_c, bo_c, out_dtype, vmem_limit)


def init_params(key, n_embd):
    """Deterministic init. Weights stored as (C_in, C_out); biases as (1, C_out)."""
    keys = jax.random.split(key, 8)
    bound = 1.0 / math.sqrt(n_embd)

    def lin(kw, kb):
        w = jax.random.uniform(kw, (n_embd, n_embd), jnp.float32, -bound, bound)
        b = jax.random.uniform(kb, (1, n_embd), jnp.float32, -bound, bound)
        return w, b

    wk, bk = lin(keys[0], keys[1])
    wq, bq = lin(keys[2], keys[3])
    wv, bv = lin(keys[4], keys[5])
    wo, bo = lin(keys[6], keys[7])
    return (wk, bk, wq, bq, wv, bv, wo, bo)


def _reference(k, q, v, params, n_head):
    """Plain-JAX f32 reference mirroring the PyTorch forward (mask=None)."""
    wk, bk, wq, bq, wv, bv, wo, bo = params
    B, T, C = k.shape
    hs = C // n_head
    kp = (k @ wk + bk).reshape(B, T, n_head, hs).transpose(0, 2, 1, 3)
    qp = (q @ wq + bq).reshape(B, T, n_head, hs).transpose(0, 2, 1, 3)
    vp = (v @ wv + bv).reshape(B, T, n_head, hs).transpose(0, 2, 1, 3)
    s = jnp.einsum('bhqd,bhkd->bhqk', qp, kp) / math.sqrt(hs)
    p = jax.nn.softmax(s, axis=-1)
    y = jnp.einsum('bhqk,bhkd->bhqd', p, vp)
    y = y.transpose(0, 2, 1, 3).reshape(B, T, C)
    return y @ wo + bo


def _run_case(B, T, C, n_head, seed, compute_dtype, atol, rtol):
    key = jax.random.PRNGKey(seed)
    kx, kq, kv, kp = jax.random.split(key, 4)
    k_in = jax.random.normal(kx, (B, T, C), jnp.float32)
    q_in = jax.random.normal(kq, (B, T, C), jnp.float32)
    v_in = jax.random.normal(kv, (B, T, C), jnp.float32)
    params = init_params(kp, C)

    out = multi_head_attention(k_in, q_in, v_in, params, n_head,
                               compute_dtype=compute_dtype)
    out = jax.block_until_ready(out)

    ref = _reference(k_in, q_in, v_in, params, n_head)
    assert out.shape == (B, T, C)
    err = float(jnp.max(jnp.abs(out - ref)))
    assert jnp.allclose(out, ref, atol=atol, rtol=rtol), f"mismatch: max err {err}"


if __name__ == "__main__":
    # Spec-sized shape (B=2, T=8, C=32, 4 heads), exact f32 MXU path.
    _run_case(B=2, T=8, C=32, n_head=4, seed=0,
              compute_dtype=jnp.float32, atol=5e-3, rtol=5e-3)
    # Same shape on the default bf16 MXU-operand path (f32 accumulation);
    # tolerance reflects bf16 operand rounding vs the f32 reference.
    _run_case(B=2, T=8, C=32, n_head=4, seed=0,
              compute_dtype=jnp.bfloat16, atol=3e-2, rtol=3e-2)
    # A larger lane-aligned shape exercising multi-head / (8,128)-friendly tiles.
    _run_case(B=2, T=128, C=256, n_head=8, seed=1,
              compute_dtype=jnp.bfloat16, atol=3e-2, rtol=3e-2)

    print("KERNEL_OK")
</pallas_src>

<mosaic_0001>
module attributes {stable_mosaic.version = 11 : i64} {
  func.func @_linear_kernel(%arg0: i32, %arg1: i32, %arg2: memref<1x8x32xf32, #tpu.memory_space<vmem>>, %arg3: memref<32x32xf32, #tpu.memory_space<vmem>>, %arg4: memref<1x32xf32, #tpu.memory_space<vmem>>, %arg5: memref<1x8x32xf32, #tpu.memory_space<vmem>>) attributes {dimension_semantics = [#tpu.dimension_semantics<parallel>, #tpu.dimension_semantics<parallel>], iteration_bounds = array<i64: 2, 1>, scalar_prefetch = 0 : i64, scratch_operands = 0 : i64, tpu.core_type = #tpu.core_type<tc>, window_params = [{transform_indices = @transform_0, window_bounds = array<i64: 1, 8, 32>}, {pipeline_mode = #tpu.pipeline_mode<synchronous>, transform_indices = @transform_1, window_bounds = array<i64: 32, 32>}, {pipeline_mode = #tpu.pipeline_mode<synchronous>, transform_indices = @transform_2, window_bounds = array<i64: 1, 32>}, {transform_indices = @transform_3, window_bounds = array<i64: 1, 8, 32>}]} {
    %c0 = arith.constant 0 : index
    %c0_0 = arith.constant 0 : index
    %c0_1 = arith.constant 0 : index
    %0 = vector.load %arg2[%c0, %c0_0, %c0_1] : memref<1x8x32xf32, #tpu.memory_space<vmem>>, vector<1x8x32xf32>
    %1 = vector.shape_cast %0 : vector<1x8x32xf32> to vector<8x32xf32>
    %c0_2 = arith.constant 0 : index
    %c0_3 = arith.constant 0 : index
    %2 = vector.load %arg3[%c0_2, %c0_3] : memref<32x32xf32, #tpu.memory_space<vmem>>, vector<32x32xf32>
    %cst = arith.constant dense<0.000000e+00> : vector<8x32xf32>
    %3 = tpu.matmul %1, %2, %cst {dimension_numbers = #tpu.dot_dimension_numbers<[1], [0], [0], [1], [0, 0, 1, 1], [], []>} : vector<8x32xf32>, vector<32x32xf32>, vector<8x32xf32> -> vector<8x32xf32>
    %c0_4 = arith.constant 0 : index
    %c0_5 = arith.constant 0 : index
    %4 = vector.load %arg4[%c0_4, %c0_5] : memref<1x32xf32, #tpu.memory_space<vmem>>, vector<1x32xf32>
    %5 = vector.broadcast %4 : vector<1x32xf32> to vector<8x32xf32>
    %6 = arith.addf %3, %5 : vector<8x32xf32>
    %c0_6 = arith.constant 0 : index
    %c0_7 = arith.constant 0 : index
    %c0_8 = arith.constant 0 : index
    %7 = vector.load %arg5[%c0_6, %c0_7, %c0_8] : memref<1x8x32xf32, #tpu.memory_space<vmem>>, vector<1x8x32xf32>
    %8 = vector.shape_cast %7 : vector<1x8x32xf32> to vector<8x32xf32>
    %9 = vector.shape_cast %6 : vector<8x32xf32> to vector<1x8x32xf32>
    tpu.vector_store %arg5[%c0_6, %c0_7, %c0_8], %9 {strides = array<i32>} : memref<1x8x32xf32, #tpu.memory_space<vmem>>, vector<1x8x32xf32>,
    return
  }
  func.func @transform_0(%arg0: i32, %arg1: i32) -> (i32, i32, i32) {
    %c0_i32 = arith.constant 0 : i32
    %c0_i32_0 = arith.constant 0 : i32
    return %arg0, %arg1, %c0_i32 : i32, i32, i32
  }
  func.func @transform_1(%arg0: i32, %arg1: i32) -> (i32, i32) {
    %c0_i32 = arith.constant 0 : i32
    %c0_i32_0 = arith.constant 0 : i32
    %c0_i32_1 = arith.constant 0 : i32
    return %c0_i32, %c0_i32_0 : i32, i32
  }
  func.func @transform_2(%arg0: i32, %arg1: i32) -> (i32, i32) {
    %c0_i32 = arith.constant 0 : i32
    %c0_i32_0 = arith.constant 0 : i32
    %c0_i32_1 = arith.constant 0 : i32
    return %c0_i32, %c0_i32_0 : i32, i32
  }
  func.func @transform_3(%arg0: i32, %arg1: i32) -> (i32, i32, i32) {
    %c0_i32 = arith.constant 0 : i32
    %c0_i32_0 = arith.constant 0 : i32
    return %arg0, %arg1, %c0_i32 : i32, i32, i32
  }
}

</mosaic_0001>

<bundles_post_ra>
// kernel: tpu_custom_call.1
= control target key start
LH: loop header
LB: loop body
LE: loop exit
PB: predicated region body
PF: predicated region fallthrough
CT: control target
= control target key end

     0   :  { %8 = vsyncpa [#allocation3], 0  ;;  %s863_s0 = inlined_call_operand.hbm [shape: f32[2,8,32], index: 0, kind: input, shape index: {}]   ;;  %s864_s1 = inlined_call_operand.hbm [shape: f32[32,32], index: 1, kind: input, shape index: {}]   ;;  %s865_s2 = inlined_call_operand.vmem [shape: f32[1,32], index: 2, kind: input, shape index: {}]   ;;  %s866_s3 = inlined_call_operand.hbm [shape: f32[2,8,32], index: 3, kind: output, shape index: {}]  }
   0x1   :  { %10 = vsyncpa [#allocation3 + $0x1], 0 }
   0x2   :  { %11 = vsyncpa [#allocation6], 0 }
   0x3   :  { %12 = vsyncpa [#allocation4], 0 }
   0x4   :  { %14 = vsyncpa [#allocation4 + $0x1], 0  ;;  %s687_s12 = smov 0   ;;  %s689_s13 = smov 0  }
   0x5   :  { %s691_s14 = smov 0   ;;  %s693_s15 = smov 0  }
   0x6   :  { %s695_s16 = smov 0   ;;  %s697_s17 = smov 0  }
   0x7 LB: > { %s410_s18 = sadd.s32 4294967295, %s658_s17   ;;  %s411_s19 = sadd.s32 4294967294, %s658_s17   ;;  %s658_s17 = sphi %s697_s17, %s20_s17   ;;  %s654_s16 = sphi %s695_s16, %s884_s16   ;;  %s650_s15 = sphi %s693_s15, %s883_s15   ;;  %s646_s14 = sphi %s691_s14, %s882_s14   ;;  %s642_s13 = sphi %s689_s13, %s881_s13   ;;  %s638_s12 = sphi %s687_s12, %s880_s12  }
   0x8   : > { %p54_p0 = scmp.ne.s32.totalorder %s642_s13, %s638_s12  ;;  %p721_p1 = scmp.eq.s32.totalorder %s410_s18, 0 }
   0x9   : > { %p725_p2 = scmp.eq.s32.totalorder %s410_s18, 1  ;;  %p128_p3 = scmp.eq.s32.totalorder %s411_s19, 1 }
   0xa   : > { %p731_p4 = por %p721_p1, %p54_p0  ;;  %p412_p5 = scmp.ge.s32.totalorder %s658_s17, 1 }
   0xb   : > { %p736_p6 = por %p128_p3, %p54_p0  ;;  %p135_p7 = scmp.lt.s32.totalorder %s658_s17, 3 }
   0xc   : > { %s870_s22 = scalar_select %p731_p4, 1, 0 }
   0xd   : > { %s871_s23 = scalar_select %p736_p6, 1, 0 }
   0xe   : > { %p741_p8 = pnand %p412_p5, %p135_p7  ;;  %s660_s25 = smov [#allocation5]  }
   0xf   : > { %s147_s26 = sshll.u32 %s660_s25, 4  ;;  %s32_s28 = sadd.s32 1, %s654_s16  ;;  %s148_s26 = int_to_ptr.vmem [resolvable:$true] %s147_s26 }
  0x10   : > { %p451_p9 = pneg %p741_p8  ;;  %s531_s29 = scalar_lea.vmem %s148_s26, 512 }
  0x11   : > { %p532_p13 = scmp.ne.s32.totalorder %s148_s26, %s531_s29  ;;  %p539_p5 = scmp.lt.s32.totalorder %s148_s26, %s148_s26 }
  0x12   : > { %p750_p11 = pnand %p451_p9, %p721_p1  ;;  %p540_p7 = scmp.lt.s32.totalorder %s531_s29, %s531_s29 }
  0x14   : > { %p522_p12 = pneg %p750_p11  ;;  %p541_p6 = por %p540_p7, %p539_p5 }
  0x16   : > { %p534_p0 = pnand %p532_p13, %p522_p12 }
  0x18   : > { %p535_p3 = pneg %p534_p0 }
  0x1a   : > { %p542_p4 = pnand %p541_p6, %p535_p3 }
  0x1c   : > { %545 = shalt.err (!%p542_p4)
}
  0x1d   : > { %s661_s30 = smov 128   ;;  %s662_s4 = smov 8  }
  0x1e   : > { %454 = dma.hbm_to_vmem [thread:$0]  (!%p750_p11), %s864_s1, 512, %s148_s26, [#allocation6], %s661_s30, %s661_s30, %s662_s4  }
  0x1f   : > { %p34_p6 = scmp.ge.s32.totalorder %s32_s28, 2  ;;  %s41_s7 = sadd.s32 1, %s646_s14 }
  0x20   : > { %p48_p4 = scmp.ne.s32.totalorder %s646_s14, %s642_s13  ;;  %p49_p9 = scmp.eq.s32.totalorder %s658_s17, 0 }
  0x21   : > { %s886_s28 = smov (%p34_p6, %s32_s28), 0  ;;  %p464_p0 = scmp.lt.s32.totalorder %s658_s17, 2 }
  0x22   : > { %p768_p12 = por %p49_p9, %p48_p4  ;;  %p774_p13 = por %p725_p2, %p48_p4 }
  0x23   : > { %s36_s10 = ssub.s32 %s654_s16, %s886_s28  ;;  %s164_s11 = sand.u32 1, %s646_s14  }
  0x24   : > { %p39_p11 = scmp.eq.s32.totalorder %s36_s10, 0  ;;  %s415_s18 = sshll.u32 %s164_s11, 3 }
  0x25   : > { %s416_s25 = sshll.u32 %s654_s16, 7  ;;  %s168_s30 = scalar_lea.vmem [#allocation2], %s415_s18 }
  0x26   : > { %s783_s19 = scalar_select %p39_p11, %s646_s14, %s41_s7  }
  0x27   : > { %s174_s29 = scalar_lea.hbm %s863_s0, %s416_s25  ;;  %s176_s4 = sshll.u32 %s168_s30, 4  ;;  %s177_s4 = int_to_ptr.vmem [resolvable:$true] %s176_s4 }
  0x28   : > { %p791_p2 = pnand %p464_p0, %p768_p12  ;;  %s165_s5 = scalar_lea.sflag [#allocation3], %s164_s11 }
  0x29   : > { %s559_s6 = scalar_lea.vmem %s177_s4, 128  ;;  %s663_s7 = smov [#allocation2]  }
  0x2a   : > { %p548_p3 = pneg %p791_p2  ;;  %p560_p5 = scmp.ne.s32.totalorder %s177_s4, %s559_s6 }
  0x2b   : > { %s564_s10 = sshll.u32 %s663_s7, 4  ;;  %s565_s10 = int_to_ptr.vmem [resolvable:$false] %s564_s10 }
  0x2c   : > { %p562_p7 = pnand %p560_p5, %p548_p3  ;;  %s566_s25 = scalar_lea.vmem %s565_s10, 256 }
  0x2d   : > { %p567_p4 = scmp.lt.s32.totalorder %s177_s4, %s565_s10  ;;  %p568_p9 = scmp.lt.s32.totalorder %s566_s25, %s559_s6 }
  0x2e   : > { %p563_p6 = pneg %p562_p7 }
  0x2f   : > { %p569_p11 = por %p568_p9, %p567_p4 }
  0x31   : > { %p570_p10 = pnand %p569_p11, %p563_p6 }
  0x33   : > { %573 = shalt.err (!%p570_p10)
}
  0x34   : > { %458 = dma.hbm_to_vmem [thread:$0]  (!%p791_p2), %s174_s29, 128, %s177_s4, %s165_s5  }
  0x35   : > { %185 = sbr.rel (%p741_p8) target bundleno = 278 (0x116), region = 32  ;;  %s802_s8 = sand.u32 (!%p741_p8), 1, %s642_s13  }
  0x36   : > { %s418_s11 = sshll.u32 (!%p741_p8), %s802_s8, 3  ;;  %s188_s18 = scalar_lea.sflag (!%p741_p8), [#allocation3], %s802_s8 }
  0x37   : > { %s191_s26 = scalar_lea.vmem (!%p741_p8), [#allocation2], %s418_s11  ;;  %p877_p12 = scmp.ne.s32.totalorder (!%p741_p8), %s870_s22, 0 }
  0x3a   : > { %625 = dma.done.wait (%p877_p12), %s188_s18, 128  }
  0x3b   : > { %627 = vsyncadd (%p877_p12), %s188_s18, 4294967168 }
  0x3c   : > { %629 = dma.done.wait (%p721_p1), [#allocation6], 512  }
  0x3d   : > { %631 = vsyncadd (%p721_p1), [#allocation6], 4294966784  ;;  %v664_v0 = vmov 0.0   ;;  %vm665_vm0 = vmmov 0   ;;  %v222_v1 = vld [vmem:[#allocation5 + $0x18] sm:$0xff]  ;;  %v221_v2 = vld [vmem:[#allocation5 + $0x10] sm:$0xff] }
  0x3e   : > { %432 = vmatprep.subr.mxu0 %v664_v0  ;;  %440 = vmatprep.mubr.msk.f32.mxu0 %vm665_vm0, %v664_v0  ;;  %v220_v3 = vld [vmem:[#allocation5 + $0x8] sm:$0xff]  ;;  %v219_v4 = vld [vmem:[#allocation5] sm:$0xff]  ;;  %v218_v5 = vld [vmem:[%s191_s26] sm:$0xff]  ;;  %vm230_vm1 = vcmask 261120   ;;  %s424_s24 = sshll.u32 %s650_s15, 7  ;;  %s217_s27 = scalar_lea.vmem [#allocation7], %s418_s11 }
  0x3f   : > { %433 = vmatpush3.msra.mxu0 %v222_v1  ;;  %v421_v6 = vld [vmem:[%s865_s2] ss:$0 sm:$0xff]  ;;  %s320_s29 = sshll.u32 %s217_s27, 4  ;;  %s821_s21 = scalar_lea.hbm %s866_s3, %s424_s24  ;;  %s321_s29 = int_to_ptr.vmem [resolvable:$true] %s320_s29 }
  0x40   : > { %434 = vmatprep.subr.mxu0 %v664_v0  ;;  %s306_s5 = scalar_lea.sflag [#allocation4], %s802_s8  ;;  %s574_s6 = scalar_lea.vmem %s321_s29, 128 }
  0x41   : > { %435 = vmatpush3.msra.mxu0 %v221_v2  ;;  %p575_p1 = scmp.ne.s32.totalorder %s321_s29, %s574_s6  ;;  %s666_s7 = smov [#allocation7]  }
  0x42   : > { %436 = vmatprep.subr.mxu0 %v664_v0  ;;  %s578_s15 = sshll.u32 %s666_s7, 4  ;;  %s579_s15 = int_to_ptr.vmem [resolvable:$false] %s578_s15 }
  0x43   : > { %437 = vmatpush3.msra.mxu0 %v220_v3  ;;  %p576_p8 = pnand %p575_p1, %p774_p13  ;;  %s580_s10 = scalar_lea.vmem %s579_s15, 256 }
  0x44   : > { %438 = vmatprep.subr.mxu0 %v664_v0  ;;  %p581_p0 = scmp.lt.s32.totalorder %s321_s29, %s579_s15  ;;  %p582_p2 = scmp.lt.s32.totalorder %s580_s10, %s574_s6 }
  0x45   : > { %439 = vmatpush3.msra.mxu0 %v219_v4  ;;  %p577_p10 = pneg %p576_p8 }
  0x46   : > { %441 = vmatmul.mubr.msk.f32.vlgmr.msra.gmra.mxu0 %vm230_vm1, %v218_v5  ;;  %p583_p3 = por %p582_p2, %p581_p0 }
  0x48   : > { %p584_p5 = pnand %p583_p3, %p577_p10 }
 0x106   : > { %v300_v7 = vpop.f32.mrf.mxu0 }
 0x107   : > { %v301_v8 = vadd.f32 %v421_v6, %v300_v7 }
 0x108   : > { %v442_v9 = vpop.f32.mrf.mxu0 }
 0x109   : > { %304 = vst.msk [vmem:[%s217_s27] sm:$0xff] %vm230_vm1, %v301_v8 }
 0x10a   : > { %587 = shalt.err (!%p584_p5)
}
 0x10b   : > { %s588_s25 = scalar_lea.hbm %s821_s21, 128  ;;  %s592_s18 = scalar_lea.hbm %s866_s3, 256 }
 0x10c   : > { %p589_p7 = scmp.ne.s32.totalorder %s821_s21, %s588_s25  ;;  %p593_p9 = scmp.lt.s32.totalorder %s821_s21, %s866_s3 }
 0x10d   : > { %p594_p11 = scmp.lt.s32.totalorder %s592_s18, %s588_s25 }
 0x10e   : > { %p590_p6 = pnand %p589_p7, %p774_p13 }
 0x10f   : > { %p595_p12 = por %p594_p11, %p593_p9 }
 0x110   : > { %p591_p4 = pneg %p590_p6 }
 0x112   : > { %p596_p1 = pnand %p595_p12, %p591_p4 }
 0x114   : > { %599 = shalt.err (!%p596_p1)
}
 0x115   : > { %449 = dma.vmem_to_hbm [thread:$0]  (%p774_p13), %s321_s29, 128, %s821_s21, %s306_s5  }
 0x116 PF: > { %s332_s22 = sand.u32 1, %s638_s12   ;;  %p878_p8 = scmp.ne.s32.totalorder %s871_s23, 0 }
 0x117   : > { %p879_p10 = scmp.ge.s32.totalorder %s658_s17, 2  ;;  %s333_s24 = scalar_lea.sflag [#allocation4], %s332_s22 }
 0x119   : > { %p460_p0 = pnand %p879_p10, %p878_p8 }
 0x11b   : > { %p461_p2 = pneg %p460_p0 }
 0x11d   : > { %633 = dma.done.wait (%p461_p2), %s333_s24, 128  }
 0x11e   : > { %635 = vsyncadd (%p461_p2), %s333_s24, 4294967168  ;;  %s20_s17 = sadd.s32 1, %s658_s17   ;;  %s880_s12 = smov %s642_s13 }
 0x11f   : > { %p17_p3 = scmp.ge.s32.totalorder %s20_s17, 4   ;;  %s881_s13 = smov %s646_s14 }
 0x120   : > { %s882_s14 = smov %s783_s19  ;;  %s883_s15 = smov %s654_s16 }
 0x121   : > { %s884_s16 = smov %s886_s28  ;;  %19 = sbr.rel (!%p17_p3) target bundleno = 7 (0x7), region = 81 }
 0x126   :  { %338 = vsyncpa [#allocation3], 1 }
 0x127   :  { %340 = vsyncpa [#allocation3 + $0x1], 1 }
 0x128   :  { %341 = vsyncpa [#allocation6], 1 }
 0x129   :  { %342 = vsyncpa [#allocation4], 1 }
 0x12a   :  { %344 = vsyncpa [#allocation4 + $0x1], 1 }

</bundles_post_ra>
